<compile_context>
chip_gen: v5e
topology: v5e:2x2
jax: 0.10.0
libtpu: 0.0.40
codegen_flags: <defaults>
</compile_context>

<pallas_src>
import numpy as np
import jax
import jax.numpy as jnp
from jax.experimental import pallas as pl
from jax.experimental.pallas import tpu as pltpu


# -----------------------------------------------------------------------------
# Fused VE-preconditioned forward over one (batch, pixel-tile) block.
# Channel-major layout: x block is (1, C, TILE_HW) with H*W on the lane axis.
#
#   y   = c_in * x = x
#   emb = silu(c_noise * we + be)                       (HID, 1)
#   h   = silu(W1^T @ y + b1 + emb)                     (HID, TILE_HW)
#   F_x = W2^T @ h + b2                                 (C,   TILE_HW)
#   D_x = c_skip * x + c_out * F_x = x + sigma * F_x
# -----------------------------------------------------------------------------
def _ve_precond_kernel(sigma_ref, cnoise_ref, x_ref, w1t_ref, b1t_ref,
                       wet_ref, bet_ref, w2t_ref, b2t_ref, out_ref):
    b = pl.program_id(0)
    sig = sigma_ref[b]                # scalar (SMEM, scalar-prefetched)
    cn = cnoise_ref[b]                # scalar = log(0.5 * sigma)

    x = x_ref[0]                      # (C, TILE_HW), lane-dense

    # Noise embedding folded into the first-layer bias, (HID, 1); computed
    # once per grid step (one step covers the whole image at this size).
    bias = jax.nn.silu(cn * wet_ref[...] + bet_ref[...]) + b1t_ref[...]

    h = jax.nn.silu(
        jnp.dot(w1t_ref[...], x, preferred_element_type=jnp.float32) + bias)   # (HID, TILE_HW)
    f = jnp.dot(w2t_ref[...], h, preferred_element_type=jnp.float32) \
        + b2t_ref[...]                                                          # (C, TILE_HW)

    # D_x = c_skip * x + c_out * F_x   (c_skip = 1, c_out = sigma)
    out_ref[0] = x + sig * f


# -----------------------------------------------------------------------------
# Wrapper: layout plumbing (NCHW -> (B, C, H*W) reshape only), scalar prefetch,
# single pallas_call.
# -----------------------------------------------------------------------------
def ve_precond_forward(x_nchw, sigma, params, *, tile_hw=None):
    B, C, H, W = x_nchw.shape
    n_pix = H * W
    if tile_hw is None:
        # Whole image per grid step at small sizes; cap the tile for big images.
        tile_hw = n_pix if n_pix <= 4096 else 2048
    assert n_pix % tile_hw == 0 and tile_hw % 128 == 0

    x = x_nchw.astype(jnp.float32).reshape(B, C, n_pix)      # no transpose
    sigma_f = jnp.broadcast_to(sigma.astype(jnp.float32).reshape(-1), (B,))
    cnoise = jnp.log(0.5 * sigma_f)                           # VE: c_noise = log(sigma/2)

    w1t, b1t, wet, bet, w2t, b2t = (params[k] for k in
                                    ("w1t", "b1t", "wet", "bet", "w2t", "b2t"))
    hid = w1t.shape[0]
    n_tiles = n_pix // tile_hw

    full = lambda b, t, s, c: (0, 0)          # weights: same block every step
    d_flat = pl.pallas_call(
        _ve_precond_kernel,
        grid_spec=pltpu.PrefetchScalarGridSpec(
            num_scalar_prefetch=2,                            # sigma, c_noise -> SMEM
            grid=(B, n_tiles),
            in_specs=[
                pl.BlockSpec((1, C, tile_hw), lambda b, t, s, c: (b, 0, t)),   # x
                pl.BlockSpec((hid, C), full),                                  # W1^T
                pl.BlockSpec((hid, 1), full),                                  # b1^T
                pl.BlockSpec((hid, 1), full),                                  # we^T
                pl.BlockSpec((hid, 1), full),                                  # be^T
                pl.BlockSpec((C, hid), full),                                  # W2^T
                pl.BlockSpec((C, 1), full),                                    # b2^T
            ],
            out_specs=pl.BlockSpec((1, C, tile_hw), lambda b, t, s, c: (b, 0, t)),
        ),
        out_shape=jax.ShapeDtypeStruct((B, C, n_pix), jnp.float32),
        compiler_params=pltpu.CompilerParams(
            dimension_semantics=("parallel", "parallel")),
    )(sigma_f, cnoise, x, w1t, b1t, wet, bet, w2t, b2t)

    return d_flat.reshape(B, C, H, W)


def round_sigma(sigma):
    """VEPrecond.round_sigma is the identity (torch.as_tensor)."""
    return jnp.asarray(sigma)


# --- pure-JAX reference (same math, no Pallas) for a correctness check -------
def reference_forward(x_nchw, sigma, params):
    x = x_nchw.astype(jnp.float32)
    B, C, H, W = x.shape
    sig = sigma.astype(jnp.float32).reshape(-1)
    cn = jnp.log(0.5 * sig)
    xf = x.reshape(B, C, H * W)
    emb = jax.nn.silu(cn[:, None, None] * params["wet"][None]
                      + params["bet"][None])                                  # (B, HID, 1)
    h = jax.nn.silu(jnp.einsum("hc,bcp->bhp", params["w1t"], xf)
                    + params["b1t"][None] + emb)                              # (B, HID, HW)
    f = jnp.einsum("ch,bhp->bcp", params["w2t"], h) + params["b2t"][None]     # (B, C, HW)
    return x + sig.reshape(-1, 1, 1, 1) * f.reshape(B, C, H, W)


if __name__ == "__main__":
    B, C, H, W = 2, 4, 16, 16       # img_channels=4, img_resolution=16
    HID = 32

    key = jax.random.PRNGKey(0)
    kx, ks, k1, k2, k3, k4, k5, k6 = jax.random.split(key, 8)

    x = jax.random.normal(kx, (B, C, H, W), jnp.float32)
    sigma = jnp.exp(jax.random.uniform(
        ks, (B,), minval=jnp.log(0.02), maxval=jnp.log(20.0))).astype(jnp.float32)

    params = {
        "w1t": jax.random.normal(k1, (HID, C), jnp.float32) / np.sqrt(C),
        "b1t": jax.random.normal(k2, (HID, 1), jnp.float32) * 0.1,
        "wet": jax.random.normal(k3, (HID, 1), jnp.float32) * 0.01,
        "bet": jax.random.normal(k4, (HID, 1), jnp.float32) * 0.1,
        "w2t": jax.random.normal(k5, (C, HID), jnp.float32) / np.sqrt(HID),
        "b2t": jax.random.normal(k6, (C, 1), jnp.float32) * 0.1,
    }

    out = ve_precond_forward(x, sigma, params)
    out = jax.block_until_ready(out)

    ref = reference_forward(x, sigma, params)
    assert out.shape == (B, C, H, W) and out.dtype == jnp.float32
    np.testing.assert_allclose(np.asarray(out), np.asarray(ref), rtol=2e-3, atol=2e-3)

    print("KERNEL_OK")
</pallas_src>

<mosaic_0001>
module attributes {stable_mosaic.version = 11 : i64} {
  func.func @_ve_precond_kernel(%arg0: i32, %arg1: i32, %arg2: memref<2xf32, #tpu.memory_space<smem>>, %arg3: memref<2xf32, #tpu.memory_space<smem>>, %arg4: memref<1x4x256xf32, #tpu.memory_space<vmem>>, %arg5: memref<32x4xf32, #tpu.memory_space<vmem>>, %arg6: memref<32x1xf32, #tpu.memory_space<vmem>>, %arg7: memref<32x1xf32, #tpu.memory_space<vmem>>, %arg8: memref<32x1xf32, #tpu.memory_space<vmem>>, %arg9: memref<4x32xf32, #tpu.memory_space<vmem>>, %arg10: memref<4x1xf32, #tpu.memory_space<vmem>>, %arg11: memref<1x4x256xf32, #tpu.memory_space<vmem>>) attributes {dimension_semantics = [#tpu.dimension_semantics<parallel>, #tpu.dimension_semantics<parallel>], iteration_bounds = array<i64: 2, 1>, scalar_prefetch = 2 : i64, scratch_operands = 0 : i64, tpu.core_type = #tpu.core_type<tc>, window_params = [{transform_indices = @transform_0, window_bounds = array<i64: 1, 4, 256>}, {pipeline_mode = #tpu.pipeline_mode<synchronous>, transform_indices = @transform_1, window_bounds = array<i64: 32, 4>}, {pipeline_mode = #tpu.pipeline_mode<synchronous>, transform_indices = @transform_2, window_bounds = array<i64: 32, 1>}, {pipeline_mode = #tpu.pipeline_mode<synchronous>, transform_indices = @transform_3, window_bounds = array<i64: 32, 1>}, {pipeline_mode = #tpu.pipeline_mode<synchronous>, transform_indices = @transform_4, window_bounds = array<i64: 32, 1>}, {pipeline_mode = #tpu.pipeline_mode<synchronous>, transform_indices = @transform_5, window_bounds = array<i64: 4, 32>}, {pipeline_mode = #tpu.pipeline_mode<synchronous>, transform_indices = @transform_6, window_bounds = array<i64: 4, 1>}, {transform_indices = @transform_7, window_bounds = array<i64: 1, 4, 256>}]} {
    %0 = arith.index_cast %arg0 : i32 to index
    %1 = memref.load %arg2[%0] : memref<2xf32, #tpu.memory_space<smem>>
    %2 = arith.index_cast %arg0 : i32 to index
    %3 = memref.load %arg3[%2] : memref<2xf32, #tpu.memory_space<smem>>
    %c0 = arith.constant 0 : index
    %c0_0 = arith.constant 0 : index
    %c0_1 = arith.constant 0 : index
    %4 = vector.load %arg4[%c0, %c0_0, %c0_1] : memref<1x4x256xf32, #tpu.memory_space<vmem>>, vector<1x4x256xf32>
    %5 = vector.shape_cast %4 : vector<1x4x256xf32> to vector<4x256xf32>
    %c0_2 = arith.constant 0 : index
    %c0_3 = arith.constant 0 : index
    %6 = vector.load %arg7[%c0_2, %c0_3] : memref<32x1xf32, #tpu.memory_space<vmem>>, vector<32x1xf32>
    %7 = vector.broadcast %3 : f32 to vector<32x1xf32>
    %8 = arith.mulf %7, %6 : vector<32x1xf32>
    %c0_4 = arith.constant 0 : index
    %c0_5 = arith.constant 0 : index
    %9 = vector.load %arg8[%c0_4, %c0_5] : memref<32x1xf32, #tpu.memory_space<vmem>>, vector<32x1xf32>
    %10 = arith.addf %8, %9 : vector<32x1xf32>
    %11 = arith.negf %10 : vector<32x1xf32>
    %12 = math.exp %11 : vector<32x1xf32>
    %cst = arith.constant 1.000000e+00 : f32
    %13 = vector.broadcast %cst : f32 to vector<32x1xf32>
    %14 = arith.addf %13, %12 : vector<32x1xf32>
    %15 = arith.divf %13, %14 : vector<32x1xf32>
    %16 = arith.mulf %10, %15 : vector<32x1xf32>
    %c0_6 = arith.constant 0 : index
    %c0_7 = arith.constant 0 : index
    %17 = vector.load %arg6[%c0_6, %c0_7] : memref<32x1xf32, #tpu.memory_space<vmem>>, vector<32x1xf32>
    %18 = arith.addf %16, %17 : vector<32x1xf32>
    %c0_8 = arith.constant 0 : index
    %c0_9 = arith.constant 0 : index
    %19 = vector.load %arg5[%c0_8, %c0_9] : memref<32x4xf32, #tpu.memory_space<vmem>>, vector<32x4xf32>
    %cst_10 = arith.constant dense<0.000000e+00> : vector<32x256xf32>
    %20 = tpu.matmul %19, %5, %cst_10 {dimension_numbers = #tpu.dot_dimension_numbers<[1], [0], [0], [1], [0, 0, 1, 1], [], []>} : vector<32x4xf32>, vector<4x256xf32>, vector<32x256xf32> -> vector<32x256xf32>
    %21 = vector.broadcast %18 : vector<32x1xf32> to vector<32x256xf32>
    %22 = arith.addf %20, %21 : vector<32x256xf32>
    %23 = arith.negf %22 : vector<32x256xf32>
    %24 = math.exp %23 : vector<32x256xf32>
    %cst_11 = arith.constant 1.000000e+00 : f32
    %25 = vector.broadcast %cst_11 : f32 to vector<32x256xf32>
    %26 = arith.addf %25, %24 : vector<32x256xf32>
    %27 = arith.divf %25, %26 : vector<32x256xf32>
    %28 = arith.mulf %22, %27 : vector<32x256xf32>
    %c0_12 = arith.constant 0 : index
    %c0_13 = arith.constant 0 : index
    %29 = vector.load %arg9[%c0_12, %c0_13] : memref<4x32xf32, #tpu.memory_space<vmem>>, vector<4x32xf32>
    %cst_14 = arith.constant dense<0.000000e+00> : vector<4x256xf32>
    %30 = tpu.matmul %29, %28, %cst_14 {dimension_numbers = #tpu.dot_dimension_numbers<[1], [0], [0], [1], [0, 0, 1, 1], [], []>} : vector<4x32xf32>, vector<32x256xf32>, vector<4x256xf32> -> vector<4x256xf32>
    %c0_15 = arith.constant 0 : index
    %c0_16 = arith.constant 0 : index
    %31 = vector.load %arg10[%c0_15, %c0_16] : memref<4x1xf32, #tpu.memory_space<vmem>>, vector<4x1xf32>
    %32 = vector.broadcast %31 : vector<4x1xf32> to vector<4x256xf32>
    %33 = arith.addf %30, %32 : vector<4x256xf32>
    %34 = vector.broadcast %1 : f32 to vector<4x256xf32>
    %35 = arith.mulf %34, %33 : vector<4x256xf32>
    %36 = arith.addf %5, %35 : vector<4x256xf32>
    %c0_17 = arith.constant 0 : index
    %c0_18 = arith.constant 0 : index
    %c0_19 = arith.constant 0 : index
    %37 = vector.load %arg11[%c0_17, %c0_18, %c0_19] : memref<1x4x256xf32, #tpu.memory_space<vmem>>, vector<1x4x256xf32>
    %38 = vector.shape_cast %37 : vector<1x4x256xf32> to vector<4x256xf32>
    %39 = vector.shape_cast %36 : vector<4x256xf32> to vector<1x4x256xf32>
    tpu.vector_store %arg11[%c0_17, %c0_18, %c0_19], %39 {strides = array<i32>} : memref<1x4x256xf32, #tpu.memory_space<vmem>>, vector<1x4x256xf32>,
    return
  }
  func.func @transform_0(%arg0: i32, %arg1: i32, %arg2: memref<2xf32, #tpu.memory_space<smem>>, %arg3: memref<2xf32, #tpu.memory_space<smem>>) -> (i32, i32, i32) {
    %c0_i32 = arith.constant 0 : i32
    %c0_i32_0 = arith.constant 0 : i32
    return %arg0, %c0_i32, %arg1 : i32, i32, i32
  }
  func.func @transform_1(%arg0: i32, %arg1: i32, %arg2: memref<2xf32, #tpu.memory_space<smem>>, %arg3: memref<2xf32, #tpu.memory_space<smem>>) -> (i32, i32) {
    %c0_i32 = arith.constant 0 : i32
    %c0_i32_0 = arith.constant 0 : i32
    %c0_i32_1 = arith.constant 0 : i32
    return %c0_i32, %c0_i32_0 : i32, i32
  }
  func.func @transform_2(%arg0: i32, %arg1: i32, %arg2: memref<2xf32, #tpu.memory_space<smem>>, %arg3: memref<2xf32, #tpu.memory_space<smem>>) -> (i32, i32) {
    %c0_i32 = arith.constant 0 : i32
    %c0_i32_0 = arith.constant 0 : i32
    %c0_i32_1 = arith.constant 0 : i32
    return %c0_i32, %c0_i32_0 : i32, i32
  }
  func.func @transform_3(%arg0: i32, %arg1: i32, %arg2: memref<2xf32, #tpu.memory_space<smem>>, %arg3: memref<2xf32, #tpu.memory_space<smem>>) -> (i32, i32) {
    %c0_i32 = arith.constant 0 : i32
    %c0_i32_0 = arith.constant 0 : i32
    %c0_i32_1 = arith.constant 0 : i32
    return %c0_i32, %c0_i32_0 : i32, i32
  }
  func.func @transform_4(%arg0: i32, %arg1: i32, %arg2: memref<2xf32, #tpu.memory_space<smem>>, %arg3: memref<2xf32, #tpu.memory_space<smem>>) -> (i32, i32) {
    %c0_i32 = arith.constant 0 : i32
    %c0_i32_0 = arith.constant 0 : i32
    %c0_i32_1 = arith.constant 0 : i32
    return %c0_i32, %c0_i32_0 : i32, i32
  }
  func.func @transform_5(%arg0: i32, %arg1: i32, %arg2: memref<2xf32, #tpu.memory_space<smem>>, %arg3: memref<2xf32, #tpu.memory_space<smem>>) -> (i32, i32) {
    %c0_i32 = arith.constant 0 : i32
    %c0_i32_0 = arith.constant 0 : i32
    %c0_i32_1 = arith.constant 0 : i32
    return %c0_i32, %c0_i32_0 : i32, i32
  }
  func.func @transform_6(%arg0: i32, %arg1: i32, %arg2: memref<2xf32, #tpu.memory_space<smem>>, %arg3: memref<2xf32, #tpu.memory_space<smem>>) -> (i32, i32) {
    %c0_i32 = arith.constant 0 : i32
    %c0_i32_0 = arith.constant 0 : i32
    %c0_i32_1 = arith.constant 0 : i32
    return %c0_i32, %c0_i32_0 : i32, i32
  }
  func.func @transform_7(%arg0: i32, %arg1: i32, %arg2: memref<2xf32, #tpu.memory_space<smem>>, %arg3: memref<2xf32, #tpu.memory_space<smem>>) -> (i32, i32, i32) {
    %c0_i32 = arith.constant 0 : i32
    %c0_i32_0 = arith.constant 0 : i32
    return %arg0, %c0_i32, %arg1 : i32, i32, i32
  }
}

</mosaic_0001>

<bundles_post_ra>
// kernel: tpu_custom_call.1
= control target key start
LH: loop header
LB: loop body
LE: loop exit
PB: predicated region body
PF: predicated region fallthrough
CT: control target
= control target key end

     0   :  { %s1107_s15 = smov [#allocation3]   ;;  %s1108_s16 = smov [#allocation4]   ;;  %s1567_s0 = inlined_call_operand.vmem [shape: f32[2], index: 0, kind: input, shape index: {}]   ;;  %s1568_s2 = inlined_call_operand.vmem [shape: f32[2,4,256], index: 2, kind: input, shape index: {}]   ;;  %s1569_s3 = inlined_call_operand.vmem [shape: f32[32,4], index: 3, kind: input, shape index: {}]   ;;  %s1570_s4 = inlined_call_operand.vmem [shape: f32[32,1], index: 4, kind: input, shape index: {}]   ;;  %s1571_s5 = inlined_call_operand.vmem [shape: f32[32,1], index: 5, kind: input, shape index: {}]   ;;  %s1572_s6 = inlined_call_operand.vmem [shape: f32[32,1], index: 6, kind: input, shape index: {}]   ;;  %s1573_s7 = inlined_call_operand.vmem [shape: f32[4,32], index: 7, kind: input, shape index: {}]   ;;  %s1574_s8 = inlined_call_operand.vmem [shape: f32[4,1], index: 8, kind: input, shape index: {}]   ;;  %s1575_s9 = inlined_call_operand.hbm [shape: f32[2,4,256], index: 9, kind: output, shape index: {}]   ;;  %s1576_s1 = inlined_call_operand.vmem [shape: f32[2], index: 1, kind: input, shape index: {}]  }
   0x1   :  { %s15_s11 = sshll.u32 %s1567_s0, 4  ;;  %s20_s14 = sshll.u32 %s1576_s1, 4  ;;  %s16_s11 = int_to_ptr.vmem [resolvable:$true] %s15_s11  ;;  %s21_s14 = int_to_ptr.vmem [resolvable:$true] %s20_s14 }
   0x2   :  { %18 = dma.vmem_to_smem %s16_s11, 16, %s1107_s15, [#allocation2] }
   0x3   :  { %23 = dma.vmem_to_smem %s21_s14, 16, %s1108_s16, [#allocation2] }
   0x4   :  { %1077 = dma.done.wait [#allocation2], 32 }
   0x5   :  { %1078 = vsyncadd [#allocation2], 4294967264 }
   0x6   :  { %26 = sfence }
   0x7   :  { %27 = vsyncpa [#allocation6], 0 }
   0x8   :  { %29 = vsyncpa [#allocation6 + $0x1], 0  ;;  %s1166_s17 = smov 0   ;;  %s1168_s18 = smov 0  }
   0x9   :  { %s1170_s0 = smov 0   ;;  %s1172_s19 = smov 0  }
   0xa   :  { %s1174_s1 = smov 0   ;;  %s1176_s20 = smov 0  }
   0xb LB: > { %s851_s21 = sadd.s32 4294967295, %s1105_s20   ;;  %s852_s22 = sadd.s32 4294967294, %s1105_s20   ;;  %s1105_s20 = sphi %s1176_s20, %s35_s20   ;;  %s1101_s1 = sphi %s1174_s1, %s1612_s1   ;;  %s1097_s19 = sphi %s1172_s19, %s1611_s19   ;;  %s1093_s0 = sphi %s1170_s0, %s1610_s0   ;;  %s1089_s18 = sphi %s1168_s18, %s1609_s18   ;;  %s1085_s17 = sphi %s1166_s17, %s1608_s17  }
   0xc   : > { %s47_s23 = sadd.s32 1, %s1101_s1  ;;  %s210_s24 = sadd.s32 1, %s1093_s0 }
   0xd   : > { %p49_p0 = scmp.ge.s32.totalorder %s47_s23, 2  ;;  %p220_p1 = scmp.ne.s32.totalorder %s1093_s0, %s1089_s18 }
   0xe   : > { %p221_p2 = scmp.eq.s32.totalorder %s851_s21, 1  ;;  %p226_p3 = scmp.ne.s32.totalorder %s1089_s18, %s1085_s17 }
   0xf   : > { %s1614_s23 = smov (%p49_p0, %s47_s23), 0  ;;  %p227_p5 = scmp.eq.s32.totalorder %s852_s22, 1 }
  0x10   : > { %1578 = sst [smem:[#allocation9_spill]] %s1614_s23  ;;  %p1206_p4 = por %p221_p2, %p220_p1 }
  0x11   : > { %s205_s26 = ssub.s32 %s1101_s1, %s1614_s23  ;;  %p855_p6 = scmp.ge.s32.totalorder %s1105_s20, 1 }
  0x12   : > { %p208_p7 = scmp.eq.s32.totalorder %s205_s26, 0  ;;  %p1213_p8 = por %p227_p5, %p226_p3 }
  0x13   : > { %p276_p9 = scmp.lt.s32.totalorder %s1105_s20, 3 }
  0x14   : > { %s1219_s28 = scalar_select %p208_p7, %s1093_s0, %s210_s24  }
  0x15   : > { %p277_p10 = pnand %p855_p6, %p276_p9 }
  0x16   : > { %p313_p11 = scmp.lt.s32.totalorder (!%p277_p10), %s1097_s19, 1  ;;  %s324_s29 = sld [smem:[#allocation4 + %s1097_s19]] (!%p277_p10) }
  0x17   : > { %280 = sbr.rel (%p277_p10) target bundleno = 376 (0x178), region = 48  ;;  %s309_s11 = sand.u32 (!%p277_p10), 1, %s1089_s18  }
  0x18   : > { %s889_s12 = sshll.u32 (!%p277_p10), %s1097_s19, 3 }
  0x19   : > { %s770_s16 = scalar_lea.hbm (!%p277_p10), %s1575_s9, %s889_s12 }
  0x1c   : > { %s314_s30 = scalar_select %p313_p11, %s1097_s19, 1  ;;  %v1109_v0 = vmov 0   ;;  %v329_v1 = vld [vmem:[%s1571_s5 + $0x18] sm:$0xff]  ;;  %v327_v2 = vld [vmem:[%s1571_s5 + $0x8] sm:$0xff]  ;;  %v328_v3 = vld [vmem:[%s1571_s5 + $0x10] sm:$0xff]  ;;  %v330_v7 = vstv %s324_s29  ;;  %vm472_vm0 = vcmask 1043456  }
  0x1d   : > { %951 = vset.pattern.permute.xlu1 %v1109_v0  ;;  %950 = vset.pattern.permute.xlu0 %v1109_v0  ;;  %v326_v4 = vld [vmem:[%s1571_s5] sm:$0xff]  ;;  %v338_v6 = vld [vmem:[%s1572_s6 + $0x18] sm:$0xff]  ;;  %v336_v8 = vld [vmem:[%s1572_s6 + $0x8] sm:$0xff]  ;;  %v334_v11 = vmul.f32 %v330_v7, %v329_v1  ;;  %v332_v12 = vmul.f32 %v330_v7, %v327_v2  ;;  %v333_v13 = vmul.f32 %v330_v7, %v328_v3  ;;  %vm459_vm1 = vcmask 31744  }
  0x1e   : > { %952 = vset.pattern.permute.xlu2 %v1109_v0  ;;  %s888_s10 = sshll.u32 %s314_s30, 3  ;;  %v337_v9 = vld [vmem:[%s1572_s6 + $0x10] sm:$0xff]  ;;  %v335_v10 = vld [vmem:[%s1572_s6] sm:$0xff]  ;;  %v331_v14 = vmul.f32 %v330_v7, %v326_v4  ;;  %v434_v26 = vld [vmem:[%s1569_s3 + $0x18] sm:$0xff]  ;;  %s323_s30 = sld [smem:[#allocation3 + %s1097_s19]] }
  0x1f   : > { %s320_s15 = scalar_lea.vmem %s1568_s2, %s888_s10  ;;  %v1254_v15 = vadd.f32 %v338_v6, %v334_v11  ;;  %v1256_v16 = vadd.f32 %v336_v8, %v332_v12  ;;  %v1258_v17 = vadd.f32 %v337_v9, %v333_v13  ;;  %v431_v22 = vld [vmem:[%s1569_s3] sm:$0xff]  ;;  %v432_v29 = vld [vmem:[%s1569_s3 + $0x8] sm:$0xff]  ;;  %v433_v39 = vld [vmem:[%s1569_s3 + $0x10] sm:$0xff]  ;;  %s856_s10 = sshll.u32 %s309_s11, 3 }
  0x20   : > { %v1239_v5 = vld [vmem:[%s320_s15] sm:$0xff]  ;;  %v1260_v18 = vadd.f32 %v335_v10, %v331_v14  ;;  %v426_v8 = vld [vmem:[%s1570_s4 + $0x18] sm:$0xff]  ;;  %s311_s23 = scalar_lea.vmem [#allocation5], %s856_s10  ;;  %s774_s15 = sshll.u32 %s770_s16, 4  ;;  %s775_s15 = int_to_ptr.hbm [resolvable:$true] %s774_s15 }
  0x21   : > { %456 = vst [vmem:[#allocation1] ss:$2 sm:$0xff] %v1239_v5  ;;  %v862_v19 = vmul.f32 -1.442695, %v1254_v15  ;;  %v860_v20 = vmul.f32 -1.442695, %v1256_v16 }
  0x22   : > { %v861_v21 = vmul.f32 -1.442695, %v1258_v17  ;;  %v859_v23 = vmul.f32 -1.442695, %v1260_v18  ;;  %s772_s29 = sshll.u32 %s311_s23, 4  ;;  %s757_s19 = scalar_lea.sflag [#allocation6], %s309_s11  ;;  %s773_s29 = int_to_ptr.vmem [resolvable:$true] %s772_s29 }
  0x23   : > { %953 = vpow2.f32 %v862_v19  ;;  %v424_v19 = vld [vmem:[%s1570_s4 + $0x8] sm:$0xff]  ;;  %s1039_s21 = sshra.s32 %s775_s15, 4  ;;  %s1040_s21 = int_to_ptr.hbm [resolvable:$true] %s1039_s21 }
  0x24   : > { %955 = vpow2.f32 %v860_v20  ;;  %s1041_s22 = scalar_lea.hbm %s1040_s21, 8  ;;  %p1046_p1 = scmp.lt.s32.totalorder %s1040_s21, %s1575_s9 }
  0x25   : > { %957 = vpow2.f32 %v861_v21  ;;  %p1042_p12 = scmp.ne.s32.totalorder %s1040_s21, %s1041_s22 }
  0x26   : > { %959 = vpow2.f32 %v859_v23 }
  0x27   : > { %p1043_p13 = pnand %p1042_p12, %p1206_p4 }
  0x28   : > { %v457_v24 = vld.sshfl [vmem:[#allocation1] sm:$0xff pattern:$0x75316420]  ;;  %v458_v25 = vld.sshfl [vmem:[#allocation1 + $0x8] sm:$0xff pattern:$0x75316420] }
  0x29   : > { %863 = vmatpush.msk.msra.mxu0 %vm472_vm0, %v457_v24  ;;  %868 = vmatpush.msk.msra.mxu1 %vm472_vm0, %v458_v25  ;;  %v954_v27 = vpop.eup %953  ;;  %p1044_p0 = pneg %p1043_p13 }
  0x2a   : > { %864 = vmatmul.msk.f32.vlgmr.msra.gmra.mxu0 %vm459_vm1, %v431_v22  ;;  %869 = vmatmul.msk.f32.vlgmr.msra.gmra.mxu1 %vm459_vm1, %v431_v22  ;;  %v956_v28 = vpop.eup %955  ;;  %v358_v30 = vadd.f32 1.0, %v954_v27 }
  0x2b   : > { %890 = vmatpush.msk.msra.mxu2 %vm472_vm0, %v457_v24  ;;  %891 = vmatpush.msk.msra.mxu3 %vm472_vm0, %v458_v25  ;;  %v958_v31 = vpop.eup %957  ;;  %v356_v32 = vadd.f32 1.0, %v956_v28 }
  0x2c   : > { %867 = vmatmul.msk.f32.vlgmr.msra.gmra.mxu2 %vm459_vm1, %v434_v26  ;;  %872 = vmatmul.msk.f32.vlgmr.msra.gmra.mxu3 %vm459_vm1, %v434_v26  ;;  %v960_v33 = vpop.eup %959  ;;  %961 = vrcp.f32 %v358_v30  ;;  %v357_v34 = vadd.f32 1.0, %v958_v31  ;;  %v413_v36 = vand.u32 2147483647, %v358_v30  ;;  %v415_v37 = vand.u32 2147483648, %v358_v30  ;;  %v423_v31 = vld [vmem:[%s1570_s4] sm:$0xff] }
  0x2d   : > { %963 = vrcp.f32 %v356_v32  ;;  %v355_v35 = vadd.f32 1.0, %v960_v33  ;;  %v383_v40 = vand.u32 2147483647, %v356_v32  ;;  %v385_v41 = vand.u32 2147483648, %v356_v32 }
  0x2e   : > { %965 = vrcp.f32 %v357_v34  ;;  %vm409_vm2 = vweird.f32 %v358_v30  ;;  %vm379_vm3 = vweird.f32 %v356_v32  ;;  %vm1290_vm5 = vcmp.eq.f32.partialorder %v413_v36, 8.507059e+37 }
  0x2f   : > { %967 = vrcp.f32 %v355_v35  ;;  %v416_v47 = vor.u32 1.1754944e-38, %v415_v37  ;;  %vm1294_vm7 = vcmp.eq.f32.partialorder %v383_v40, 8.507059e+37  ;;  %v386_v51 = vor.u32 1.1754944e-38, %v385_v41 }
  0x30   : > { %vm394_vm8 = vweird.f32 %v357_v34  ;;  %v398_v55 = vand.u32 2147483647, %v357_v34  ;;  %v400_v58 = vand.u32 2147483648, %v357_v34  ;;  %vm364_vm10 = vweird.f32 %v355_v35 }
  0x31   : > { %v370_v63 = vand.u32 2147483648, %v355_v35  ;;  %v368_v2 = vand.u32 2147483647, %v355_v35 }
  0x32   : > { %865 = vmatmul.msk.f32.gmra.mxu0 %vm459_vm1, %v432_v29  ;;  %870 = vmatmul.msk.f32.gmra.mxu1 %vm459_vm1, %v432_v29  ;;  %v962_v38 = vpop.eup %961  ;;  %vm1310_vm14 = vcmp.eq.f32.partialorder %v398_v55, 8.507059e+37  ;;  %v401_v11 = vor.u32 1.1754944e-38, %v400_v58 }
  0x33   : > { %v964_v42 = vpop.eup %963  ;;  %v405_v43 = vmul.f32 %v962_v38, %v358_v30  ;;  %vm410_vm4 = vweird.f32 %v962_v38  ;;  %v371_v21 = vor.u32 1.1754944e-38, %v370_v63 }
  0x34   : > { %v375_v44 = vmul.f32 %v964_v42, %v356_v32  ;;  %v966_v48 = vpop.eup %965  ;;  %vm380_vm6 = vweird.f32 %v964_v42  ;;  %vm1299_vm9 = vmor %vm409_vm2, %vm410_vm4  ;;  %vm369_vm2 = vcmp.eq.f32.partialorder %v368_v2, 8.507059e+37 }
  0x35   : > { %v406_v45 = vsub.f32 1.0, %v405_v43  ;;  %v968_v52 = vpop.eup %967  ;;  %v390_v54 = vmul.f32 %v966_v48, %v357_v34  ;;  %vm1304_vm11 = vmor %vm379_vm3, %vm380_vm6  ;;  %vm395_vm12 = vweird.f32 %v966_v48 }
  0x36   : > { %v376_v49 = vsub.f32 1.0, %v375_v44  ;;  %v360_v59 = vmul.f32 %v968_v52, %v355_v35  ;;  %vm365_vm13 = vweird.f32 %v968_v52  ;;  %vm1322_vm15 = vmor %vm394_vm8, %vm395_vm12 }
  0x37   : > { %v407_v53 = vmul.f32 %v962_v38, %v406_v45  ;;  %v391_v62 = vsub.f32 1.0, %v390_v54 }
  0x38   : > { %v377_v57 = vmul.f32 %v964_v42, %v376_v49  ;;  %v361_v1 = vsub.f32 1.0, %v360_v59 }
  0x39   : > { %v408_v60 = vadd.f32 %v962_v38, %v407_v53  ;;  %v392_v4 = vmul.f32 %v966_v48, %v391_v62 }
  0x3a   : > { %866 = vmatmul.msk.f32.gmra.mxu0 %vm459_vm1, %v433_v39  ;;  %871 = vmatmul.msk.f32.gmra.mxu1 %vm459_vm1, %v433_v39  ;;  %v378_v0 = vadd.f32 %v964_v42, %v377_v57  ;;  %v362_v12 = vmul.f32 %v968_v52, %v361_v1  ;;  %vm366_vm1 = vmor %vm364_vm10, %vm365_vm13 }
  0x3b   : > { %v412_v3 = vsel %vm1299_vm9, %v962_v38, %v408_v60  ;;  %v393_v20 = vadd.f32 %v966_v48, %v392_v4 }
  0x3c   : > { %v417_v7 = vsel %vm1290_vm5, %v416_v47, %v412_v3  ;;  %v382_v9 = vsel %vm1304_vm11, %v964_v42, %v378_v0  ;;  %v363_v23 = vadd.f32 %v968_v52, %v362_v12 }
  0x3d   : > { %v422_v13 = vmul.f32 %v417_v7, %v1254_v15  ;;  %v387_v14 = vsel %vm1294_vm7, %v386_v51, %v382_v9  ;;  %v397_v15 = vsel %vm1322_vm15, %v966_v48, %v393_v20 }
  0x3e   : > { %v420_v22 = vmul.f32 %v387_v14, %v1256_v16  ;;  %v402_v26 = vsel %vm1310_vm14, %v401_v11, %v397_v15  ;;  %v367_v27 = vsel %vm366_vm1, %v968_v52, %v363_v23  ;;  %v425_v16 = vld [vmem:[%s1570_s4 + $0x10] sm:$0xff] }
  0x3f   : > { %v430_v24 = vadd.f32 %v426_v8, %v422_v13  ;;  %v421_v28 = vmul.f32 %v402_v26, %v1258_v17  ;;  %v372_v29 = vsel %vm369_vm2, %v371_v21, %v367_v27 }
  0x40   : > { %v428_v25 = vadd.f32 %v424_v19, %v420_v22  ;;  %v419_v30 = vmul.f32 %v372_v29, %v1260_v18  ;;  %v696_v19 = vld [vmem:[%s1574_s8] sm:$0xf] }
  0x41   : > { %452 = vperm.xlu0 %950, %v430_v24   ;;  %v429_v32 = vadd.f32 %v425_v16, %v421_v28  ;;  %699 = vperm.xlu2 %952, %v696_v19  }
  0x42   : > { %442 = vperm.xlu1 %951, %v428_v25   ;;  %v427_v33 = vadd.f32 %v423_v31, %v419_v30 }
  0x49   : > { %447 = vperm.xlu0 %950, %v429_v32  }
  0x4a   : > { %437 = vperm.xlu1 %951, %v427_v33  }
  0xa7   : > { %v494_v34 = vpop.f32.mrf.mxu0  ;;  %v523_v35 = vpop.f32.mrf.mxu1 }
  0xaf   : > { %v497_v36 = vpop.f32.mrf.mxu0  ;;  %v503_v17 = vpop.f32.mrf.mxu2 }
  0xb0   : > { %v532_v37 = vpop.f32.mrf.mxu3  ;;  %v526_v38 = vpop.f32.mrf.mxu1 }
  0xb3   : > { %v453_v39 = vpop.permute.xlu0 %452 }
  0xb4   : > { %v443_v40 = vpop.permute.xlu1 %442  ;;  %v1347_v41 = vadd.f32 %v503_v17, %v453_v39  ;;  %v1349_v42 = vadd.f32 %v532_v37, %v453_v39 }
  0xb5   : > { %v1351_v18 = vadd.f32 %v497_v36, %v443_v40  ;;  %v1353_v43 = vadd.f32 %v526_v38, %v443_v40 }
  0xb6   : > { %v879_v44 = vmul.f32 -1.442695, %v1347_v41  ;;  %v880_v47 = vmul.f32 -1.442695, %v1349_v42 }
  0xb7   : > { %v875_v45 = vmul.f32 -1.442695, %v1351_v18  ;;  %v876_v46 = vmul.f32 -1.442695, %v1353_v43  ;;  %v500_v48 = vpop.f32.mrf.mxu0 }
  0xb8   : > { %969 = vpow2.f32 %v879_v44  ;;  %v529_v52 = vpop.f32.mrf.mxu1 }
  0xb9   : > { %971 = vpow2.f32 %v875_v45 }
  0xba   : > { %973 = vpow2.f32 %v876_v46 }
  0xbb   : > { %975 = vpow2.f32 %v880_v47  ;;  %v448_v49 = vpop.permute.xlu0 %447 }
  0xbc   : > { %v438_v50 = vpop.permute.xlu1 %437  ;;  %v1359_v51 = vadd.f32 %v500_v48, %v448_v49  ;;  %v1368_v59 = vadd.f32 %v529_v52, %v448_v49  ;;  %v695_v48 = vld [vmem:[%s1573_s7] sm:$0xf] }
  0xbd   : > { %v1361_v53 = vadd.f32 %v494_v34, %v438_v50  ;;  %v1363_v55 = vadd.f32 %v523_v35, %v438_v50 }
  0xbe   : > { %v970_v54 = vpop.eup %969  ;;  %v877_v56 = vmul.f32 -1.442695, %v1359_v51  ;;  %v878_v3 = vmul.f32 -1.442695, %v1368_v59 }
  0xbf   : > { %v972_v57 = vpop.eup %971  ;;  %v1366_v58 = vadd.f32 1.0, %v970_v54  ;;  %v873_v0 = vmul.f32 -1.442695, %v1361_v53  ;;  %v874_v2 = vmul.f32 -1.442695, %v1363_v55 }
  0xc0   : > { %v974_v60 = vpop.eup %973  ;;  %v1370_v61 = vadd.f32 1.0, %v972_v57  ;;  %977 = vpow2.f32 %v877_v56 }
  0xc1   : > { %v976_v62 = vpop.eup %975  ;;  %979 = vrcp.f32 %v1366_v58  ;;  %v1373_v63 = vadd.f32 1.0, %v974_v60  ;;  %v666_v4 = vand.u32 2147483647, %v1366_v58  ;;  %v668_v6 = vand.u32 2147483648, %v1366_v58 }
  0xc2   : > { %981 = vrcp.f32 %v1370_v61  ;;  %v1377_v1 = vadd.f32 1.0, %v976_v62  ;;  %v608_v11 = vand.u32 2147483648, %v1370_v61  ;;  %vm662_vm3 = vweird.f32 %v1366_v58 }
  0xc3   : > { %983 = vrcp.f32 %v1373_v63  ;;  %vm1393_vm4 = vcmp.eq.f32.partialorder %v666_v4, 8.507059e+37  ;;  %v669_v21 = vor.u32 1.1754944e-38, %v668_v6  ;;  %v606_v22 = vand.u32 2147483647, %v1370_v61 }
  0xc4   : > { %985 = vrcp.f32 %v1377_v1  ;;  %v681_v10 = vand.u32 2147483647, %v1377_v1  ;;  %vm677_vm5 = vweird.f32 %v1377_v1  ;;  %v683_v15 = vand.u32 2147483648, %v1377_v1 }
  0xc5   : > { %987 = vpow2.f32 %v873_v0  ;;  %vm602_vm7 = vweird.f32 %v1370_v61  ;;  %v1416_v16 = vor.u32 1.1754944e-38, %v608_v11  ;;  %v621_v30 = vand.u32 2147483647, %v1373_v63 }
  0xc6   : > { %v978_v7 = vpop.eup %977  ;;  %989 = vpow2.f32 %v874_v2  ;;  %vm1411_vm6 = vcmp.eq.f32.partialorder %v681_v10, 8.507059e+37  ;;  %vm1432_vm11 = vcmp.eq.f32.partialorder %v606_v22, 8.507059e+37  ;;  %v684_v50 = vor.u32 1.1754944e-38, %v683_v15 }
  0xc7   : > { %v980_v8 = vpop.eup %979  ;;  %v1385_v9 = vadd.f32 1.0, %v978_v7  ;;  %991 = vpow2.f32 %v878_v3  ;;  %vm617_vm12 = vweird.f32 %v1373_v63  ;;  %v623_v57 = vand.u32 2147483648, %v1373_v63 }
  0xc8   : > { %v1389_v12 = vpop.eup %981  ;;  %v658_v13 = vmul.f32 %v980_v8, %v1366_v58  ;;  %vm663_vm8 = vweird.f32 %v980_v8 }
  0xc9   : > { %v1400_v20 = vpop.eup %983  ;;  %993 = vrcp.f32 %v1385_v9  ;;  %v598_v25 = vmul.f32 %v1389_v12, %v1370_v61  ;;  %v636_v37 = vand.u32 2147483647, %v1385_v9  ;;  %vm664_vm9 = vmor %vm662_vm3, %vm663_vm8  ;;  %v638_v47 = vand.u32 2147483648, %v1385_v9 }
  0xca   : > { %v986_v23 = vpop.eup %985  ;;  %v659_v24 = vsub.f32 1.0, %v658_v13  ;;  %v613_v26 = vmul.f32 %v1400_v20, %v1373_v63  ;;  %vm603_vm13 = vweird.f32 %v1389_v12  ;;  %vm632_vm15 = vweird.f32 %v1385_v9 }
  0xcb   : > { %v988_v27 = vpop.eup %987  ;;  %v673_v28 = vmul.f32 %v986_v23, %v1377_v1  ;;  %v599_v34 = vsub.f32 1.0, %v598_v25  ;;  %vm678_vm10 = vweird.f32 %v986_v23  ;;  %vm1449_vm1 = vcmp.eq.f32.partialorder %v636_v37, 8.507059e+37  ;;  %vm1459_vm3 = vmor %vm602_vm7, %vm603_vm13 }
  0xcc   : > { %v990_v31 = vpop.eup %989  ;;  %v1419_v32 = vadd.f32 1.0, %v988_v27  ;;  %v660_v33 = vmul.f32 %v980_v8, %v659_v24  ;;  %v614_v38 = vsub.f32 1.0, %v613_v26  ;;  %vm679_vm14 = vmor %vm677_vm5, %vm678_vm10  ;;  %v639_v4 = vor.u32 1.1754944e-38, %v638_v47 }
  0xcd   : > { %v992_v35 = vpop.eup %991  ;;  %v1421_v36 = vadd.f32 1.0, %v990_v31  ;;  %v674_v17 = vsub.f32 1.0, %v673_v28  ;;  %v600_v44 = vmul.f32 %v1389_v12, %v599_v34  ;;  %v624_v13 = vor.u32 1.1754944e-38, %v623_v57  ;;  %v700_v57 = vpop.permute.xlu2 %699 }
  0xce   : > { %995 = vrcp.f32 %v1419_v32  ;;  %v1425_v39 = vadd.f32 1.0, %v992_v35  ;;  %v661_v40 = vadd.f32 %v980_v8, %v660_v33  ;;  %v615_v0 = vmul.f32 %v1400_v20, %v614_v38 }
  0xcf   : > { %v994_v45 = vpop.eup %993  ;;  %997 = vrcp.f32 %v1421_v36  ;;  %v675_v46 = vmul.f32 %v986_v23, %v674_v17  ;;  %v601_v62 = vadd.f32 %v1389_v12, %v600_v44  ;;  %vm1478_vm8 = vcmp.eq.f32.partialorder %v621_v30, 8.507059e+37 }
  0xd0   : > { %999 = vrcp.f32 %v1425_v39  ;;  %v665_v49 = vsel %vm664_vm9, %v980_v8, %v661_v40  ;;  %v628_v52 = vmul.f32 %v994_v45, %v1385_v9  ;;  %vm633_vm2 = vweird.f32 %v994_v45 }
  0xd1   : > { %v670_v54 = vsel %vm1393_vm4, %v669_v21, %v665_v49  ;;  %v676_v56 = vadd.f32 %v986_v23, %v675_v46  ;;  %vm618_vm4 = vweird.f32 %v1400_v20  ;;  %v605_v11 = vsel %vm1459_vm3, %v1389_v12, %v601_v62  ;;  %vm634_vm7 = vmor %vm632_vm15, %vm633_vm2 }
  0xd2   : > { %v693_v58 = vmul.f32 %v670_v54, %v1347_v41  ;;  %v629_v60 = vsub.f32 1.0, %v628_v52  ;;  %vm647_vm5 = vweird.f32 %v1425_v39  ;;  %v616_v61 = vadd.f32 %v1400_v20, %v615_v0  ;;  %vm1495_vm9 = vmor %vm617_vm12, %vm618_vm4 }
  0xd3   : > { %v680_v2 = vsel %vm679_vm14, %v986_v23, %v676_v56  ;;  %v651_v22 = vand.u32 2147483647, %v1425_v39  ;;  %v576_v24 = vand.u32 2147483647, %v1419_v32  ;;  %v610_v25 = vsel %vm1432_vm11, %v1416_v16, %v605_v11 }
  0xd4   : > { %v996_v6 = vpop.eup %995  ;;  %718 = vmatpush.msrb.mxu2 %v693_v58  ;;  %v685_v41 = vsel %vm1411_vm6, %v684_v50, %v680_v2  ;;  %v630_v1 = vmul.f32 %v994_v45, %v629_v60  ;;  %vm572_vm6 = vweird.f32 %v1419_v32  ;;  %v578_v26 = vand.u32 2147483648, %v1419_v32 }
  0xd5   : > { %v1464_v8 = vpop.eup %997  ;;  %v694_v10 = vmul.f32 %v685_v41, %v1349_v42  ;;  %v568_v14 = vmul.f32 %v996_v6, %v1419_v32  ;;  %vm573_vm10 = vweird.f32 %v996_v6  ;;  %v653_v31 = vand.u32 2147483648, %v1425_v39 }
  0xd6   : > { %v1000_v19 = vpop.eup %999  ;;  %v631_v21 = vadd.f32 %v994_v45, %v630_v1  ;;  %v583_v9 = vmul.f32 %v1464_v8, %v1421_v36  ;;  %v620_v33 = vsel %vm1495_vm9, %v1400_v20, %v616_v61  ;;  %v689_v17 = vmul.f32 %v610_v25, %v1351_v18  ;;  %vm574_vm12 = vmor %vm572_vm6, %vm573_vm10 }
  0xd7   : > { %738 = vmatpush.msrb.mxu3 %v694_v10  ;;  %v643_v42 = vmul.f32 %v1000_v19, %v1425_v39  ;;  %v569_v23 = vsub.f32 1.0, %v568_v14  ;;  %vm648_vm11 = vweird.f32 %v1000_v19  ;;  %v579_v37 = vor.u32 1.1754944e-38, %v578_v26 }
  0xd8   : > { %v635_v15 = vsel %vm634_vm7, %v994_v45, %v631_v21  ;;  %v584_v34 = vsub.f32 1.0, %v583_v9  ;;  %vm588_vm13 = vweird.f32 %v1464_v8  ;;  %vm577_vm14 = vcmp.eq.f32.partialorder %v576_v24, 8.507059e+37  ;;  %vm649_vm15 = vmor %vm647_vm5, %vm648_vm11 }
  0xd9   : > { %v640_v27 = vsel %vm1449_vm1, %v639_v4, %v635_v15  ;;  %v644_v28 = vsub.f32 1.0, %v643_v42  ;;  %v570_v30 = vmul.f32 %v996_v6, %v569_v23  ;;  %v591_v20 = vand.u32 2147483647, %v1421_v36 }
  0xda   : > { %v691_v16 = vmul.f32 %v640_v27, %v1359_v51  ;;  %v585_v38 = vmul.f32 %v1464_v8, %v584_v34  ;;  %v593_v51 = vand.u32 2147483648, %v1421_v36  ;;  %v654_v18 = vor.u32 1.1754944e-38, %v653_v31 }
  0xdb   : > { %v645_v35 = vmul.f32 %v1000_v19, %v644_v28  ;;  %v571_v63 = vadd.f32 %v996_v6, %v570_v30  ;;  %vm587_vm1 = vweird.f32 %v1421_v36  ;;  %vm652_vm2 = vcmp.eq.f32.partialorder %v651_v22, 8.507059e+37 }
  0xdc   : > { %719 = vmatpush.msrb.mxu2 %v691_v16  ;;  %v586_v32 = vadd.f32 %v1464_v8, %v585_v38  ;;  %vm589_vm3 = vmor %vm587_vm1, %vm588_vm13  ;;  %vm702_vm4 = vcmask 261120   ;;  %v625_v49 = vsel %vm1478_vm8, %v624_v13, %v620_v33  ;;  %v594_v50 = vor.u32 1.1754944e-38, %v593_v51 }
  0xdd   : > { %v646_v40 = vadd.f32 %v1000_v19, %v645_v35  ;;  %v575_v44 = vsel %vm574_vm12, %v996_v6, %v571_v63  ;;  %vm592_vm5 = vcmp.eq.f32.partialorder %v591_v20, 8.507059e+37  ;;  %v690_v54 = vmul.f32 %v625_v49, %v1353_v43 }
  0xde   : > { %720 = vmatpush.msrb.mxu2 %v689_v17  ;;  %v580_v45 = vsel %vm577_vm14, %v579_v37, %v575_v44  ;;  %v590_v36 = vsel %vm589_vm3, %v1464_v8, %v586_v32  ;;  %v746_v60 = vstv %s323_s30  ;;  %s1045_s30 = scalar_lea.hbm %s1575_s9, 16 }
  0xdf   : > { %v650_v46 = vsel %vm649_vm15, %v1000_v19, %v646_v40  ;;  %v687_v47 = vmul.f32 %v580_v45, %v1361_v53  ;;  %v595_v53 = vsel %vm592_vm5, %v594_v50, %v590_v36  ;;  %p1047_p2 = scmp.lt.s32.totalorder %s1045_s30, %s1041_s22 }
  0xe0   : > { %v655_v39 = vsel %vm652_vm2, %v654_v18, %v650_v46  ;;  %v688_v56 = vmul.f32 %v595_v53, %v1363_v55 }
  0xe1   : > { %v692_v52 = vmul.f32 %v655_v39, %v1368_v59  ;;  %721 = vmatpush.msrb.mxu2 %v687_v47  ;;  %p1048_p3 = por %p1047_p2, %p1046_p1 }
  0xe2   : > { %881 = vmatmul.msk.f32.vlgmr.msrb.gmra.mxu2 %vm702_vm4, %v695_v48 }
  0xe3   : > { %739 = vmatpush.msrb.mxu3 %v692_v52  ;;  %p1049_p5 = pnand %p1048_p3, %p1044_p0 }
  0xe5   : > { %740 = vmatpush.msrb.mxu3 %v690_v54 }
  0xe7   : > { %741 = vmatpush.msrb.mxu3 %v688_v56 }
  0xe8   : > { %882 = vmatmul.msk.f32.vlgmr.msrb.gmra.mxu3 %vm702_vm4, %v695_v48 }
 0x165   : > { %v723_v58 = vpop.f32.mrf.mxu2 }
 0x166   : > { %v724_v0 = vadd.f32 %v723_v58, %v700_v57 }
 0x168   : > { %v747_v55 = vmul.f32 %v746_v60, %v724_v0 }
 0x16b   : > { %v743_v59 = vpop.f32.mrf.mxu3 }
 0x16c   : > { %v744_v62 = vadd.f32 %v743_v59, %v700_v57 }
 0x16e   : > { %v748_v43 = vmul.f32 %v746_v60, %v744_v62 }
 0x170   : > { %v751_v2 = vrot.slane %v748_v43, 4 }
 0x172   : > { %v752_v3 = vsel %vm472_vm0, %v747_v55, %v751_v2 }
 0x173   : > { %v754_v4 = vadd.f32 %v752_v3, %v1239_v5 }
 0x175   : > { %755 = vst [vmem:[%s311_s23] sm:$0xff] %v754_v4 }
 0x176   : > { %1052 = shalt.err (!%p1049_p5)
}
 0x177   : > { %892 = dma.vmem_to_hbm [thread:$0]  (%p1206_p4), %s773_s29, 128, %s775_s15, %s757_s19  }
 0x178 PF: > { %p898_p6 = scmp.ge.s32.totalorder %s1105_s20, 2  ;;  %s786_s11 = sand.u32 1, %s1085_s17  }
 0x179   : > { %s787_s13 = scalar_lea.sflag [#allocation6], %s786_s11 }
 0x17a   : > { %p895_p7 = pnand %p898_p6, %p1213_p8 }
 0x17c   : > { %p896_p9 = pneg %p895_p7 }
 0x17e   : > { %1080 = dma.done.wait (%p896_p9), %s787_s13, 128  }
 0x17f   : > { %1082 = vsyncadd (%p896_p9), %s787_s13, 4294967168  ;;  %s35_s20 = sadd.s32 1, %s1105_s20   ;;  %s1607_s25 = sld [smem:[#allocation9_spill]] }
 0x180   : > { %p32_p10 = scmp.ge.s32.totalorder %s35_s20, 4   ;;  %s1608_s17 = smov %s1089_s18 }
 0x181   : > { %s1609_s18 = smov %s1093_s0  ;;  %s1610_s0 = smov %s1219_s28 }
 0x182   : > { %s1611_s19 = smov %s1101_s1  ;;  %34 = sbr.rel (!%p32_p10) target bundleno = 11 (0xb), region = 83 }
 0x185   : > { %s1612_s1 = smov %s1607_s25 }
 0x187   :  { %793 = vsyncpa [#allocation6], 1 }
 0x188   :  { %795 = vsyncpa [#allocation6 + $0x1], 1 }

</bundles_post_ra>
